<compile_context>
chip_gen: v6e
topology: v6e:2x2x1
jax: 0.10.0
libtpu: 0.0.40
codegen_flags: <defaults>
</compile_context>

<pallas_src>
import jax
import jax.numpy as jnp
from jax import lax
from jax.experimental import pallas as pl
from jax.experimental.pallas import tpu as pltpu

NEG_SLOPE = 0.01  # nn.LeakyReLU default negative_slope
LANE_TILE = 128   # lanes per grid tile (one vreg width)


def _resblock_kernel(x_ref, m1_ref, m2_ref, b1_ref, b2_ref, o_ref, lhs_ref):
    # x_ref  : (H, LT)        lane-dense activation tile (f32)
    # m*_ref : (3*LT, LT)     fused banded conv weights (bf16), rows = [dy0|dy1|dy2]
    # b*_ref : (1, LT)        bias broadcast along lanes (f32)
    # o_ref  : (H, LT)
    # lhs_ref: (H, 3*LT)      f32 scratch: [rows h-1 | rows h | rows h+1]
    H, LT = x_ref.shape
    zrow = jnp.zeros((1, LT), jnp.float32)

    def build_lhs(src):
        # dy=0 tap: row h reads input row h-1 (zero row above the image)
        lhs_ref[0:1, 0:LT] = zrow
        lhs_ref[1:H, 0:LT] = src[0:H - 1, :]
        # dy=1 tap: same row
        lhs_ref[:, LT:2 * LT] = src
        # dy=2 tap: row h reads input row h+1 (zero row below the image)
        lhs_ref[0:H - 1, 2 * LT:3 * LT] = src[1:H, :]
        lhs_ref[H - 1:H, 2 * LT:3 * LT] = zrow

    x = x_ref[...].astype(jnp.float32)

    # --- conv1: single K=3*LT bf16 MXU matmul, bias folded into the f32 result ---
    build_lhs(x)
    y1 = jnp.dot(lhs_ref[...].astype(jnp.bfloat16), m1_ref[...],
                 preferred_element_type=jnp.float32) + b1_ref[...]

    # --- LeakyReLU ---
    act = jnp.where(y1 > 0, y1, NEG_SLOPE * y1)

    # --- conv2: reuse the same scratch ---
    build_lhs(act)
    y2 = jnp.dot(lhs_ref[...].astype(jnp.bfloat16), m2_ref[...],
                 preferred_element_type=jnp.float32) + b2_ref[...]

    # --- residual add; full-width lane-dense store ---
    o_ref[...] = (x + y2).astype(o_ref.dtype)


def _banded_weights_tile(w_hwio, images_per_tile, W, C):
    """(3,3,C,C) HWIO conv weights -> (3*LT, LT) fused banded matmul RHS.

    Row index = dy*LT + (n*W*C + w_in*C + ci), col index = n*W*C + w_out*C + co,
    with w_in = w_out + dx - 1 and zeros outside 0 <= w_in < W.  Block-diagonal
    over the `images_per_tile` images packed into one 128-lane tile.
    """
    w = w_hwio.astype(jnp.float32)
    eye_img = jnp.eye(images_per_tile, dtype=jnp.float32)
    mats = []
    for dy in range(3):
        m = jnp.zeros((W * C, W * C), jnp.float32)
        for dx in range(3):
            band = jnp.eye(W, k=1 - dx, dtype=jnp.float32)   # [w_in, w_out]
            m = m + jnp.kron(band, w[dy, dx])                 # (W*C, W*C)
        mats.append(jnp.kron(eye_img, m))                     # (LT, LT)
    return jnp.concatenate(mats, axis=0)                      # (3*LT, LT)


def make_resblock_params(w1, b1, w2, b2, W, C, lane_tile=LANE_TILE):
    """Build (once per weight update) the bf16 banded weights + f32 bias rows."""
    assert lane_tile % (W * C) == 0, "a lane tile must hold whole images"
    ipt = lane_tile // (W * C)
    m1 = _banded_weights_tile(w1, ipt, W, C).astype(jnp.bfloat16)
    m2 = _banded_weights_tile(w2, ipt, W, C).astype(jnp.bfloat16)
    b1t = jnp.tile(b1.astype(jnp.float32), ipt * W).reshape(1, lane_tile)
    b2t = jnp.tile(b2.astype(jnp.float32), ipt * W).reshape(1, lane_tile)
    return m1, m2, b1t, b2t


def resblock_pallas_slab(x2d, params, lane_tile=LANE_TILE):
    """x2d: (H, N*W*C) lane-dense slab.  Keep this layout across stacked blocks."""
    H, L = x2d.shape
    assert L % lane_tile == 0, "lane axis (N*W*C) must be a multiple of 128"
    # TODO(synk): pad the lane axis when N*W*C is not a multiple of the 128-lane tile.
    n_tiles = L // lane_tile
    m1, m2, b1t, b2t = params

    return pl.pallas_call(
        _resblock_kernel,
        out_shape=jax.ShapeDtypeStruct((H, L), x2d.dtype),
        grid_spec=pltpu.PrefetchScalarGridSpec(
            num_scalar_prefetch=0,
            grid=(n_tiles,),
            in_specs=[
                pl.BlockSpec((H, lane_tile), lambda t: (0, t)),
                pl.BlockSpec((3 * lane_tile, lane_tile), lambda t: (0, 0)),
                pl.BlockSpec((3 * lane_tile, lane_tile), lambda t: (0, 0)),
                pl.BlockSpec((1, lane_tile), lambda t: (0, 0)),
                pl.BlockSpec((1, lane_tile), lambda t: (0, 0)),
            ],
            out_specs=pl.BlockSpec((H, lane_tile), lambda t: (0, t)),
            scratch_shapes=[pltpu.VMEM((H, 3 * lane_tile), jnp.float32)],
        ),
        compiler_params=pltpu.CompilerParams(
            dimension_semantics=("parallel",)),
    )(x2d, m1, m2, b1t, b2t)


def resblock_pallas(x_nhwc, params):
    """Convenience NHWC wrapper (pays the slab transpose once per call)."""
    N, H, W, C = x_nhwc.shape
    x2d = jnp.transpose(x_nhwc, (1, 0, 2, 3)).reshape(H, N * W * C)
    out2d = resblock_pallas_slab(x2d, params)
    return jnp.transpose(out2d.reshape(H, N, W, C), (1, 0, 2, 3))


def resblock_reference(x_nhwc, w1, b1, w2, b2):
    dn = ("NHWC", "HWIO", "NHWC")
    y = lax.conv_general_dilated(x_nhwc, w1, (1, 1), "SAME",
                                 dimension_numbers=dn) + b1
    y = jnp.where(y > 0, y, NEG_SLOPE * y)
    y = lax.conv_general_dilated(y, w2, (1, 1), "SAME",
                                 dimension_numbers=dn) + b2
    return x_nhwc + y


if __name__ == "__main__":
    # Shapes implied by the module: x is NCHW (2, 4, 16, 16), channels=4.
    N, C, H, W = 2, 4, 16, 16
    key = jax.random.PRNGKey(0)
    kx, kw1, kw2 = jax.random.split(key, 3)

    x_nchw = jax.random.normal(kx, (N, C, H, W), jnp.float32)
    # layer_init analogue: small weights, zero bias.
    w1 = 0.1 * jax.random.normal(kw1, (3, 3, C, C), jnp.float32)  # HWIO
    b1 = jnp.zeros((C,), jnp.float32)
    w2 = 0.1 * jax.random.normal(kw2, (3, 3, C, C), jnp.float32)  # HWIO
    b2 = jnp.zeros((C,), jnp.float32)

    # Build the banded bf16 weights ONCE (hoisted out of the per-forward path).
    params = make_resblock_params(w1, b1, w2, b2, W, C)
    params = jax.block_until_ready(params)

    # NCHW -> NHWC for the kernel wrapper.
    x_nhwc = jnp.transpose(x_nchw, (0, 2, 3, 1))

    out = resblock_pallas(x_nhwc, params)
    out = jax.block_until_ready(out)

    ref = resblock_reference(x_nhwc, w1, b1, w2, b2)
    assert out.shape == (N, H, W, C)
    # bf16 MXU pass (f32 accumulation) vs the XLA conv reference.
    assert jnp.allclose(out, ref, atol=2e-2, rtol=2e-2), "mismatch vs reference conv"

    # Back to NCHW to match the PyTorch module's output convention.
    out_nchw = jnp.transpose(out, (0, 3, 1, 2))
    assert out_nchw.shape == (N, C, H, W)
    print("KERNEL_OK")
</pallas_src>

<mosaic_0001>
module attributes {stable_mosaic.version = 11 : i64} {
  func.func @_resblock_kernel(%arg0: i32, %arg1: memref<16x128xf32, #tpu.memory_space<vmem>>, %arg2: memref<384x128xbf16, #tpu.memory_space<vmem>>, %arg3: memref<384x128xbf16, #tpu.memory_space<vmem>>, %arg4: memref<1x128xf32, #tpu.memory_space<vmem>>, %arg5: memref<1x128xf32, #tpu.memory_space<vmem>>, %arg6: memref<16x128xf32, #tpu.memory_space<vmem>>, %arg7: memref<16x384xf32, #tpu.memory_space<vmem>>) attributes {dimension_semantics = [#tpu.dimension_semantics<parallel>], iteration_bounds = array<i64: 1>, scalar_prefetch = 0 : i64, scratch_operands = 1 : i64, tpu.core_type = #tpu.core_type<tc>, window_params = [{transform_indices = @transform_0, window_bounds = array<i64: 16, 128>}, {pipeline_mode = #tpu.pipeline_mode<synchronous>, transform_indices = @transform_1, window_bounds = array<i64: 384, 128>}, {pipeline_mode = #tpu.pipeline_mode<synchronous>, transform_indices = @transform_2, window_bounds = array<i64: 384, 128>}, {pipeline_mode = #tpu.pipeline_mode<synchronous>, transform_indices = @transform_3, window_bounds = array<i64: 1, 128>}, {pipeline_mode = #tpu.pipeline_mode<synchronous>, transform_indices = @transform_4, window_bounds = array<i64: 1, 128>}, {transform_indices = @transform_5, window_bounds = array<i64: 16, 128>}]} {
    %cst = arith.constant 0.000000e+00 : f32
    %0 = vector.broadcast %cst : f32 to vector<1x128xf32>
    %c0 = arith.constant 0 : index
    %c0_0 = arith.constant 0 : index
    %1 = vector.load %arg1[%c0, %c0_0] : memref<16x128xf32, #tpu.memory_space<vmem>>, vector<16x128xf32>
    %c0_1 = arith.constant 0 : index
    %c0_2 = arith.constant 0 : index
    %2 = vector.load %arg7[%c0_1, %c0_2] : memref<16x384xf32, #tpu.memory_space<vmem>>, vector<1x128xf32>
    tpu.vector_store %arg7[%c0_1, %c0_2], %0 {strides = array<i32>} : memref<16x384xf32, #tpu.memory_space<vmem>>, vector<1x128xf32>,
    %3 = vector.extract_strided_slice %1 {offsets = [0, 0], sizes = [15, 128], strides = [1, 1]} : vector<16x128xf32> to vector<15x128xf32>
    %c1 = arith.constant 1 : index
    %c0_3 = arith.constant 0 : index
    %4 = vector.load %arg7[%c1, %c0_3] : memref<16x384xf32, #tpu.memory_space<vmem>>, vector<15x128xf32>
    tpu.vector_store %arg7[%c1, %c0_3], %3 {strides = array<i32>} : memref<16x384xf32, #tpu.memory_space<vmem>>, vector<15x128xf32>,
    %c0_4 = arith.constant 0 : index
    %c128 = arith.constant 128 : index
    %5 = vector.load %arg7[%c0_4, %c128] : memref<16x384xf32, #tpu.memory_space<vmem>>, vector<16x128xf32>
    tpu.vector_store %arg7[%c0_4, %c128], %1 {strides = array<i32>} : memref<16x384xf32, #tpu.memory_space<vmem>>, vector<16x128xf32>,
    %6 = vector.extract_strided_slice %1 {offsets = [1, 0], sizes = [15, 128], strides = [1, 1]} : vector<16x128xf32> to vector<15x128xf32>
    %c0_5 = arith.constant 0 : index
    %c256 = arith.constant 256 : index
    %7 = vector.load %arg7[%c0_5, %c256] : memref<16x384xf32, #tpu.memory_space<vmem>>, vector<15x128xf32>
    tpu.vector_store %arg7[%c0_5, %c256], %6 {strides = array<i32>} : memref<16x384xf32, #tpu.memory_space<vmem>>, vector<15x128xf32>,
    %c15 = arith.constant 15 : index
    %c256_6 = arith.constant 256 : index
    %8 = vector.load %arg7[%c15, %c256_6] : memref<16x384xf32, #tpu.memory_space<vmem>>, vector<1x128xf32>
    tpu.vector_store %arg7[%c15, %c256_6], %0 {strides = array<i32>} : memref<16x384xf32, #tpu.memory_space<vmem>>, vector<1x128xf32>,
    %c0_7 = arith.constant 0 : index
    %c0_8 = arith.constant 0 : index
    %9 = vector.load %arg7[%c0_7, %c0_8] : memref<16x384xf32, #tpu.memory_space<vmem>>, vector<16x384xf32>
    %10 = arith.truncf %9 : vector<16x384xf32> to vector<16x384xbf16>
    %c0_9 = arith.constant 0 : index
    %c0_10 = arith.constant 0 : index
    %11 = vector.load %arg2[%c0_9, %c0_10] : memref<384x128xbf16, #tpu.memory_space<vmem>>, vector<384x128xbf16>
    %cst_11 = arith.constant dense<0.000000e+00> : vector<16x128xf32>
    %12 = tpu.matmul %10, %11, %cst_11 {dimension_numbers = #tpu.dot_dimension_numbers<[1], [0], [0], [1], [0, 0, 1, 1], [], []>} : vector<16x384xbf16>, vector<384x128xbf16>, vector<16x128xf32> -> vector<16x128xf32>
    %c0_12 = arith.constant 0 : index
    %c0_13 = arith.constant 0 : index
    %13 = vector.load %arg4[%c0_12, %c0_13] : memref<1x128xf32, #tpu.memory_space<vmem>>, vector<1x128xf32>
    %14 = vector.broadcast %13 : vector<1x128xf32> to vector<16x128xf32>
    %15 = arith.addf %12, %14 : vector<16x128xf32>
    %cst_14 = arith.constant 0.000000e+00 : f32
    %16 = vector.broadcast %cst_14 : f32 to vector<16x128xf32>
    %17 = arith.cmpf ogt, %15, %16 : vector<16x128xf32>
    %cst_15 = arith.constant 0.00999999977 : f32
    %18 = vector.broadcast %cst_15 : f32 to vector<16x128xf32>
    %19 = arith.mulf %18, %15 : vector<16x128xf32>
    %20 = arith.select %17, %15, %19 : vector<16x128xi1>, vector<16x128xf32>
    %c0_16 = arith.constant 0 : index
    %c0_17 = arith.constant 0 : index
    %21 = vector.load %arg7[%c0_16, %c0_17] : memref<16x384xf32, #tpu.memory_space<vmem>>, vector<1x128xf32>
    tpu.vector_store %arg7[%c0_16, %c0_17], %0 {strides = array<i32>} : memref<16x384xf32, #tpu.memory_space<vmem>>, vector<1x128xf32>,
    %22 = vector.extract_strided_slice %20 {offsets = [0, 0], sizes = [15, 128], strides = [1, 1]} : vector<16x128xf32> to vector<15x128xf32>
    %c1_18 = arith.constant 1 : index
    %c0_19 = arith.constant 0 : index
    %23 = vector.load %arg7[%c1_18, %c0_19] : memref<16x384xf32, #tpu.memory_space<vmem>>, vector<15x128xf32>
    tpu.vector_store %arg7[%c1_18, %c0_19], %22 {strides = array<i32>} : memref<16x384xf32, #tpu.memory_space<vmem>>, vector<15x128xf32>,
    %c0_20 = arith.constant 0 : index
    %c128_21 = arith.constant 128 : index
    %24 = vector.load %arg7[%c0_20, %c128_21] : memref<16x384xf32, #tpu.memory_space<vmem>>, vector<16x128xf32>
    tpu.vector_store %arg7[%c0_20, %c128_21], %20 {strides = array<i32>} : memref<16x384xf32, #tpu.memory_space<vmem>>, vector<16x128xf32>,
    %25 = vector.extract_strided_slice %20 {offsets = [1, 0], sizes = [15, 128], strides = [1, 1]} : vector<16x128xf32> to vector<15x128xf32>
    %c0_22 = arith.constant 0 : index
    %c256_23 = arith.constant 256 : index
    %26 = vector.load %arg7[%c0_22, %c256_23] : memref<16x384xf32, #tpu.memory_space<vmem>>, vector<15x128xf32>
    tpu.vector_store %arg7[%c0_22, %c256_23], %25 {strides = array<i32>} : memref<16x384xf32, #tpu.memory_space<vmem>>, vector<15x128xf32>,
    %c15_24 = arith.constant 15 : index
    %c256_25 = arith.constant 256 : index
    %27 = vector.load %arg7[%c15_24, %c256_25] : memref<16x384xf32, #tpu.memory_space<vmem>>, vector<1x128xf32>
    tpu.vector_store %arg7[%c15_24, %c256_25], %0 {strides = array<i32>} : memref<16x384xf32, #tpu.memory_space<vmem>>, vector<1x128xf32>,
    %c0_26 = arith.constant 0 : index
    %c0_27 = arith.constant 0 : index
    %28 = vector.load %arg7[%c0_26, %c0_27] : memref<16x384xf32, #tpu.memory_space<vmem>>, vector<16x384xf32>
    %29 = arith.truncf %28 : vector<16x384xf32> to vector<16x384xbf16>
    %c0_28 = arith.constant 0 : index
    %c0_29 = arith.constant 0 : index
    %30 = vector.load %arg3[%c0_28, %c0_29] : memref<384x128xbf16, #tpu.memory_space<vmem>>, vector<384x128xbf16>
    %cst_30 = arith.constant dense<0.000000e+00> : vector<16x128xf32>
    %31 = tpu.matmul %29, %30, %cst_30 {dimension_numbers = #tpu.dot_dimension_numbers<[1], [0], [0], [1], [0, 0, 1, 1], [], []>} : vector<16x384xbf16>, vector<384x128xbf16>, vector<16x128xf32> -> vector<16x128xf32>
    %c0_31 = arith.constant 0 : index
    %c0_32 = arith.constant 0 : index
    %32 = vector.load %arg5[%c0_31, %c0_32] : memref<1x128xf32, #tpu.memory_space<vmem>>, vector<1x128xf32>
    %33 = vector.broadcast %32 : vector<1x128xf32> to vector<16x128xf32>
    %34 = arith.addf %31, %33 : vector<16x128xf32>
    %35 = arith.addf %1, %34 : vector<16x128xf32>
    %c0_33 = arith.constant 0 : index
    %c0_34 = arith.constant 0 : index
    %36 = vector.load %arg6[%c0_33, %c0_34] : memref<16x128xf32, #tpu.memory_space<vmem>>, vector<16x128xf32>
    tpu.vector_store %arg6[%c0_33, %c0_34], %35 {strides = array<i32>} : memref<16x128xf32, #tpu.memory_space<vmem>>, vector<16x128xf32>,
    return
  }
  func.func @transform_0(%arg0: i32) -> (i32, i32) {
    %c0_i32 = arith.constant 0 : i32
    %c0_i32_0 = arith.constant 0 : i32
    return %c0_i32, %arg0 : i32, i32
  }
  func.func @transform_1(%arg0: i32) -> (i32, i32) {
    %c0_i32 = arith.constant 0 : i32
    %c0_i32_0 = arith.constant 0 : i32
    %c0_i32_1 = arith.constant 0 : i32
    return %c0_i32, %c0_i32_0 : i32, i32
  }
  func.func @transform_2(%arg0: i32) -> (i32, i32) {
    %c0_i32 = arith.constant 0 : i32
    %c0_i32_0 = arith.constant 0 : i32
    %c0_i32_1 = arith.constant 0 : i32
    return %c0_i32, %c0_i32_0 : i32, i32
  }
  func.func @transform_3(%arg0: i32) -> (i32, i32) {
    %c0_i32 = arith.constant 0 : i32
    %c0_i32_0 = arith.constant 0 : i32
    %c0_i32_1 = arith.constant 0 : i32
    return %c0_i32, %c0_i32_0 : i32, i32
  }
  func.func @transform_4(%arg0: i32) -> (i32, i32) {
    %c0_i32 = arith.constant 0 : i32
    %c0_i32_0 = arith.constant 0 : i32
    %c0_i32_1 = arith.constant 0 : i32
    return %c0_i32, %c0_i32_0 : i32, i32
  }
  func.func @transform_5(%arg0: i32) -> (i32, i32) {
    %c0_i32 = arith.constant 0 : i32
    %c0_i32_0 = arith.constant 0 : i32
    return %c0_i32, %arg0 : i32, i32
  }
}

</mosaic_0001>

<bundles_post_ra>
// kernel: tpu_custom_call.1
= control target key start
LH: loop header
LB: loop body
LE: loop exit
PB: predicated region body
PF: predicated region fallthrough
CT: control target
= control target key end

     0   :  { %10 = vsyncpa [#allocation4], 0  ;;  %s1115_s0 = inlined_call_operand.hbm [shape: f32[16,128], index: 0, kind: input, shape index: {}]   ;;  %s1116_s1 = inlined_call_operand.hbm [shape: bf16[384,128], index: 1, kind: input, shape index: {}]   ;;  %s1117_s2 = inlined_call_operand.hbm [shape: bf16[384,128], index: 2, kind: input, shape index: {}]   ;;  %s1118_s3 = inlined_call_operand.vmem [shape: f32[1,128], index: 3, kind: input, shape index: {}]   ;;  %s1119_s4 = inlined_call_operand.vmem [shape: f32[1,128], index: 4, kind: input, shape index: {}]   ;;  %s1120_s5 = inlined_call_operand.hbm [shape: f32[16,128], index: 5, kind: output, shape index: {}]  }
   0x1   :  { %11 = vsyncpa [#allocation7], 0 }
   0x2   :  { %12 = vsyncpa [#allocation5], 0  ;;  %s1011_s18 = smov [#allocation6]  }
   0x3   :  { %s30_s19 = sshll.u32 %s1011_s18, 4  ;;  %s31_s19 = int_to_ptr.vmem [resolvable:$true] %s30_s19 }
   0x4   :  { %s933_s20 = scalar_lea.vmem %s31_s19, 3072  ;;  %p938_p1 = scmp.lt.s32.totalorder %s31_s19, %s31_s19 }
   0x5   :  { %p934_p0 = scmp.ne.s32.totalorder %s31_s19, %s933_s20  ;;  %p939_p2 = scmp.lt.s32.totalorder %s933_s20, %s933_s20 }
   0x7   :  { %p940_p3 = por %p939_p2, %p938_p1 }
   0x9   :  { %p941_p4 = pnand %p940_p3, %p934_p0 }
   0xb   :  { %944 = shalt.err (!%p941_p4)
}
   0xc   :  { %s1012_s21 = smov 64   ;;  %s1013_s22 = smov 4  }
   0xd   :  { %36 = dma.hbm_to_vmem [thread:$0]  %s1116_s1, 3072, %s31_s19, [#allocation7], %s1012_s21, %s1012_s21, %s1013_s22  }
   0xe   :  { %s1014_s25 = smov [#allocation3]  }
   0xf   :  { %s18_s26 = sshll.u32 %s1014_s25, 4  ;;  %s19_s26 = int_to_ptr.vmem [resolvable:$true] %s18_s26 }
  0x10   :  { %s953_s27 = scalar_lea.vmem %s19_s26, 256  ;;  %p958_p6 = scmp.lt.s32.totalorder %s19_s26, %s19_s26 }
  0x11   :  { %p954_p5 = scmp.ne.s32.totalorder %s19_s26, %s953_s27  ;;  %p959_p7 = scmp.lt.s32.totalorder %s953_s27, %s953_s27 }
  0x13   :  { %p960_p8 = por %p959_p7, %p958_p6 }
  0x15   :  { %p961_p9 = pnand %p960_p8, %p954_p5 }
  0x17   :  { %964 = shalt.err (!%p961_p9)
}
  0x18   :  { %s1015_s28 = smov 128   ;;  %s1016_s29 = smov 8  }
  0x19   :  { %24 = dma.hbm_to_vmem [thread:$0]  %s1115_s0, 256, %s19_s26, [#allocation4], %s1015_s28, %s1015_s28, %s1016_s29  }
  0x1a   :  { %s1017_s1 = smov [#allocation8]  }
  0x1b   :  { %s42_s7 = sshll.u32 %s1017_s1, 4  ;;  %s43_s7 = int_to_ptr.vmem [resolvable:$true] %s42_s7 }
  0x1c   :  { %s973_s8 = scalar_lea.vmem %s43_s7, 3072  ;;  %p978_p11 = scmp.lt.s32.totalorder %s43_s7, %s43_s7 }
  0x1d   :  { %p974_p10 = scmp.ne.s32.totalorder %s43_s7, %s973_s8  ;;  %p979_p12 = scmp.lt.s32.totalorder %s973_s8, %s973_s8 }
  0x1f   :  { %p980_p13 = por %p979_p12, %p978_p11 }
  0x21   :  { %p981_p0 = pnand %p980_p13, %p974_p10 }
  0x23   :  { %984 = shalt.err (!%p981_p0)
}
  0x24   :  { %48 = dma.hbm_to_vmem [thread:$0]  %s1117_s2, 3072, %s43_s7, [#allocation7], %s1012_s21, %s1012_s21, %s1013_s22  }
  0x25   :  { %1005 = dma.done.wait [#allocation4], 256  }
  0x26   :  { %1006 = vsyncadd [#allocation4], 4294967040 }
  0x27   :  { %1007 = dma.done.wait [#allocation7], 6144  }
  0x28   :  { %1008 = vsyncadd [#allocation7], 4294961152  ;;  %v1018_v0 = vmov 0.0   ;;  %vm1019_vm0 = vmmov 0   ;;  %v877_v1 = vld [vmem:[#allocation6 + $0x78] sm:$0xff]   ;;  %v880_v4 = vld [vmem:[#allocation6 + $0x70] sm:$0xff]  }
  0x29   :  { %827 = vmatprep.subr.bf16.mxu1 %v1018_v0  ;;  %65 = vst [vmem:[#allocation2] sm:$0x1] %v1018_v0  ;;  %86 = vst [vmem:[#allocation2 + $0x2f] sm:$0x1] %v1018_v0  ;;  %843 = vmatprep.mubr.msk.bf16.mxu1 %vm1019_vm0, %v1018_v0  ;;  %v878_v2 = vld [vmem:[#allocation6 + $0x38] sm:$0xff]   ;;  %v881_v5 = vld [vmem:[#allocation6 + $0x30] sm:$0xff]  }
  0x2a   :  { %765 = vmatprep.subr.bf16.mxu0 %v877_v1  ;;  %v879_v3 = vld [vmem:[#allocation6 + $0xb8] sm:$0xff]   ;;  %v882_v6 = vld [vmem:[#allocation6 + $0xb0] sm:$0xff]   ;;  %v883_v7 = vld [vmem:[#allocation6 + $0x68] sm:$0xff]   ;;  %vm68_vm1 = vcmask 1040384   ;;  %vm78_vm2 = vcmask 1046528   ;;  %s1020_s12 = smov [#allocation9]  }
  0x2b   :  { %766 = vmatpush3.bf16.msra.mxu0 %v878_v2  ;;  %828 = vmatpush3.bf16.msra.mxu1 %v879_v3  ;;  %v884_v8 = vld [vmem:[#allocation6 + $0x28] sm:$0xff]   ;;  %v886_v10 = vld [vmem:[#allocation6 + $0x60] sm:$0xff]   ;;  %v889_v13 = vld [vmem:[#allocation6 + $0x58] sm:$0xff]   ;;  %s702_s13 = sshll.u32 %s1020_s12, 4  ;;  %s703_s13 = int_to_ptr.vmem [resolvable:$true] %s702_s13 }
  0x2c   :  { %767 = vmatprep.subr.bf16.mxu0 %v880_v4  ;;  %829 = vmatprep.subr.bf16.mxu1 %v1018_v0  ;;  %v885_v9 = vld [vmem:[#allocation6 + $0xa8] sm:$0xff]   ;;  %v887_v11 = vld [vmem:[#allocation6 + $0x20] sm:$0xff]   ;;  %v890_v14 = vld [vmem:[#allocation6 + $0x18] sm:$0xff]   ;;  %p990_p2 = scmp.lt.s32.totalorder %s703_s13, %s703_s13 }
  0x2d   :  { %v888_v12 = vld [vmem:[#allocation6 + $0xa0] sm:$0xff]   ;;  %v891_v15 = vld [vmem:[#allocation6 + $0x98] sm:$0xff]   ;;  %v892_v16 = vld [vmem:[#allocation6 + $0x50] sm:$0xff]  }
  0x2e   :  { %v893_v17 = vld [vmem:[#allocation6 + $0x10] sm:$0xff]   ;;  %v895_v19 = vld [vmem:[#allocation6 + $0x48] sm:$0xff]   ;;  %v898_v22 = vld [vmem:[#allocation6 + $0x40] sm:$0xff]  }
  0x2f   :  { %768 = vmatpush3.bf16.msra.mxu0 %v881_v5  ;;  %830 = vmatpush3.bf16.msra.mxu1 %v882_v6  ;;  %v894_v18 = vld [vmem:[#allocation6 + $0x90] sm:$0xff]   ;;  %v896_v20 = vld [vmem:[#allocation6 + $0x8] sm:$0xff]   ;;  %v1075_v24 = vld [vmem:[#allocation3 + $0x8] sm:$0xff] }
  0x30   :  { %769 = vmatprep.subr.bf16.mxu0 %v883_v7  ;;  %831 = vmatprep.subr.bf16.mxu1 %v1018_v0  ;;  %v897_v21 = vld [vmem:[#allocation6 + $0x88] sm:$0xff]   ;;  %v1073_v23 = vld [vmem:[#allocation3] sm:$0xff]  ;;  %v899_v25 = vld [vmem:[#allocation6] sm:$0xff]   ;;  %v70_v29 = vrot.slane %v1075_v24, 7  ;;  %v80_v30 = vrot.slane %v1075_v24, 1 }
  0x31   :  { %v94_v26 = vpack.c.bf16 %v1075_v24, %v1073_v23  ;;  %v69_v27 = vrot.slane %v1073_v23, 7  ;;  %v900_v28 = vld [vmem:[#allocation6 + $0x80] sm:$0xff]   ;;  %v79_v31 = vrot.slane %v1073_v23, 1  ;;  %v901_v32 = vld [vmem:[#allocation8 + $0x78] sm:$0xff]   ;;  %v904_v41 = vld [vmem:[#allocation8 + $0x70] sm:$0xff]  }
  0x32   :  { %85 = vst [vmem:[#allocation2 + $0x28] sm:$0x7f] %v80_v30  ;;  %v902_v34 = vld [vmem:[#allocation8 + $0x38] sm:$0xff]   ;;  %v905_v42 = vld [vmem:[#allocation8 + $0x30] sm:$0xff]   ;;  %v907_v43 = vld [vmem:[#allocation8 + $0x68] sm:$0xff]  }
  0x33   :  { %770 = vmatpush3.bf16.msra.mxu0 %v884_v8  ;;  %832 = vmatpush3.bf16.msra.mxu1 %v885_v9  ;;  %74 = vst [vmem:[#allocation2] sm:$0xfe] %v69_v27  ;;  %v71_v33 = vsel %vm68_vm1, %v69_v27, %v70_v29  ;;  %v81_v35 = vsel %vm78_vm2, %v79_v31, %v80_v30  ;;  %v903_v36 = vld [vmem:[#allocation8 + $0xb8] sm:$0xff]   ;;  %v906_v44 = vld [vmem:[#allocation8 + $0xb0] sm:$0xff]   ;;  %v908_v45 = vld [vmem:[#allocation8 + $0x28] sm:$0xff]  }
  0x34   :  { %771 = vmatprep.subr.bf16.mxu0 %v886_v10  ;;  %833 = vmatprep.subr.bf16.mxu1 %v1018_v0  ;;  %v910_v46 = vld [vmem:[#allocation8 + $0x60] sm:$0xff]   ;;  %v909_v47 = vld [vmem:[#allocation8 + $0xa8] sm:$0xff]   ;;  %v913_v49 = vld [vmem:[#allocation8 + $0x58] sm:$0xff]  }
  0x35   :  { %327 = vmatprep.mubr.bf16.mxu0 %v94_v26  ;;  %v911_v48 = vld [vmem:[#allocation8 + $0x20] sm:$0xff]   ;;  %v914_v51 = vld [vmem:[#allocation8 + $0x18] sm:$0xff]   ;;  %v916_v52 = vld [vmem:[#allocation8 + $0x50] sm:$0xff]  }
  0x36   :  { %v912_v50 = vld [vmem:[#allocation8 + $0xa0] sm:$0xff]   ;;  %v915_v53 = vld [vmem:[#allocation8 + $0x98] sm:$0xff]   ;;  %v917_v54 = vld [vmem:[#allocation8 + $0x10] sm:$0xff]  }
  0x37   :  { %772 = vmatpush3.bf16.msra.mxu0 %v887_v11  ;;  %834 = vmatpush3.bf16.msra.mxu1 %v888_v12  ;;  %v919_v55 = vld [vmem:[#allocation8 + $0x48] sm:$0xff]   ;;  %v918_v56 = vld [vmem:[#allocation8 + $0x90] sm:$0xff]   ;;  %v922_v59 = vld [vmem:[#allocation8 + $0x40] sm:$0xff]  }
  0x38   :  { %773 = vmatprep.subr.bf16.mxu0 %v889_v13  ;;  %835 = vmatprep.subr.bf16.mxu1 %v1018_v0  ;;  %v920_v57 = vld [vmem:[#allocation8 + $0x8] sm:$0xff]   ;;  %v923_v60 = vld [vmem:[#allocation8] sm:$0xff]  }
  0x39   :  { %v92_v39 = vld [vmem:[#allocation2 + $0x28] sm:$0xff]  ;;  %v924_v61 = vld [vmem:[#allocation8 + $0x80] sm:$0xff]  }
  0x3a   :  { %v87_v37 = vld [vmem:[#allocation2] sm:$0xff]  ;;  %v95_v40 = vpack.c.bf16 %v92_v39, %v81_v35  ;;  %402 = vst [vmem:[#allocation2 + $0x2f] sm:$0x1] %v1018_v0  ;;  %v921_v58 = vld [vmem:[#allocation8 + $0x88] sm:$0xff]  }
  0x3b   :  { %774 = vmatpush3.bf16.msra.mxu0 %v890_v14  ;;  %836 = vmatpush3.bf16.msra.mxu1 %v891_v15  ;;  %v93_v38 = vpack.c.bf16 %v71_v33, %v87_v37  ;;  %383 = vst [vmem:[#allocation2] sm:$0x1] %v1018_v0  ;;  %v715_v1 = vld [vmem:[%s1118_s3] ss:$0 sm:$0xff] }
  0x3c   :  { %775 = vmatprep.subr.bf16.mxu0 %v892_v16  ;;  %837 = vmatprep.subr.bf16.mxu1 %v1018_v0  ;;  %v740_v31 = vld [vmem:[%s1119_s4] ss:$0 sm:$0xff]  ;;  %s985_s4 = scalar_lea.vmem %s703_s13, 256 }
  0x3d   :  { %p986_p1 = scmp.ne.s32.totalorder %s703_s13, %s985_s4  ;;  %p991_p3 = scmp.lt.s32.totalorder %s985_s4, %s985_s4 }
  0x3f   :  { %776 = vmatpush3.bf16.msra.mxu0 %v893_v17  ;;  %838 = vmatpush3.bf16.msra.mxu1 %v894_v18  ;;  %p992_p4 = por %p991_p3, %p990_p2 }
  0x40   :  { %777 = vmatprep.subr.bf16.mxu0 %v895_v19  ;;  %839 = vmatprep.subr.bf16.mxu1 %v1018_v0 }
  0x41   :  { %p993_p5 = pnand %p992_p4, %p986_p1 }
  0x43   :  { %778 = vmatpush3.bf16.msra.mxu0 %v896_v20  ;;  %840 = vmatpush3.bf16.msra.mxu1 %v897_v21 }
  0x44   :  { %779 = vmatprep.subr.bf16.mxu0 %v898_v22  ;;  %841 = vmatprep.subr.bf16.mxu1 %v1018_v0 }
  0x47   :  { %780 = vmatpush3.bf16.msra.mxu0 %v899_v25  ;;  %842 = vmatpush3.bf16.msra.mxu1 %v900_v28 }
  0x48   :  { %796 = vmatprep.subr.bf16.mxu0 %v901_v32  ;;  %847 = vmatprep.subr.bf16.mxu1 %v1018_v0 }
  0x4a   :  { %328 = vmatmul.mubr.bf16.vlgmr.msra.gmra.mxu0 %v93_v38  ;;  %844 = vmatmul.mubr.bf16.vlgmr.msra.gmra.mxu1 %v95_v40 }
  0x4b   :  { %797 = vmatpush3.bf16.msra.mxu0 %v902_v34  ;;  %848 = vmatpush3.bf16.msra.mxu1 %v903_v36 }
  0x4c   :  { %863 = vmatprep.mubr.msk.bf16.mxu1 %vm1019_vm0, %v1018_v0  ;;  %849 = vmatprep.subr.bf16.mxu1 %v1018_v0 }
  0x4d   :  { %798 = vmatprep.subr.bf16.mxu0 %v904_v41 }
  0x4f   :  { %799 = vmatpush3.bf16.msra.mxu0 %v905_v42  ;;  %850 = vmatpush3.bf16.msra.mxu1 %v906_v44 }
  0x50   :  { %800 = vmatprep.subr.bf16.mxu0 %v907_v43  ;;  %851 = vmatprep.subr.bf16.mxu1 %v1018_v0 }
  0x53   :  { %801 = vmatpush3.bf16.msra.mxu0 %v908_v45  ;;  %852 = vmatpush3.bf16.msra.mxu1 %v909_v47 }
  0x54   :  { %802 = vmatprep.subr.bf16.mxu0 %v910_v46  ;;  %853 = vmatprep.subr.bf16.mxu1 %v1018_v0 }
  0x57   :  { %803 = vmatpush3.bf16.msra.mxu0 %v911_v48  ;;  %854 = vmatpush3.bf16.msra.mxu1 %v912_v50 }
  0x58   :  { %804 = vmatprep.subr.bf16.mxu0 %v913_v49  ;;  %855 = vmatprep.subr.bf16.mxu1 %v1018_v0 }
  0x5b   :  { %805 = vmatpush3.bf16.msra.mxu0 %v914_v51  ;;  %856 = vmatpush3.bf16.msra.mxu1 %v915_v53 }
  0x5c   :  { %806 = vmatprep.subr.bf16.mxu0 %v916_v52  ;;  %857 = vmatprep.subr.bf16.mxu1 %v1018_v0 }
  0x5f   :  { %807 = vmatpush3.bf16.msra.mxu0 %v917_v54  ;;  %858 = vmatpush3.bf16.msra.mxu1 %v918_v56 }
  0x60   :  { %808 = vmatprep.subr.bf16.mxu0 %v919_v55  ;;  %859 = vmatprep.subr.bf16.mxu1 %v1018_v0 }
  0x63   :  { %809 = vmatpush3.bf16.msra.mxu0 %v920_v57  ;;  %860 = vmatpush3.bf16.msra.mxu1 %v921_v58 }
  0x64   :  { %810 = vmatprep.subr.bf16.mxu0 %v922_v59  ;;  %861 = vmatprep.subr.bf16.mxu1 %v1018_v0 }
  0x67   :  { %811 = vmatpush3.bf16.msra.mxu0 %v923_v60  ;;  %862 = vmatpush3.bf16.msra.mxu1 %v924_v61 }
 0x10a   :  { %v781_v62 = vpop.f32.mrf.mxu0  ;;  %v370_v63 = vpop.f32.mrf.mxu1 }
 0x10c   :  { %v782_v2 = vpop.f32.mrf.mxu0  ;;  %v845_v4 = vpop.f32.mrf.mxu1 }
 0x10d   :  { %v783_v3 = vadd.f32 %v782_v2, %v781_v62 }
 0x10e   :  { %v784_v5 = vpop.f32.mrf.mxu0  ;;  %v373_v7 = vpop.f32.mrf.mxu1 }
 0x10f   :  { %v330_v6 = vadd.f32 %v783_v3, %v715_v1 }
 0x110   :  { %v785_v8 = vpop.f32.mrf.mxu0  ;;  %v846_v11 = vpop.f32.mrf.mxu1 }
 0x111   :  { %v371_v9 = vadd.f32 %v370_v63, %v330_v6  ;;  %v786_v10 = vadd.f32 %v785_v8, %v784_v5 }
 0x113   :  { %vm377_vm3 = vcmp.gt.f32.partialorder %v371_v9, 0.0  ;;  %v379_v12 = vmul.f32 0.01, %v371_v9  ;;  %v333_v0 = vadd.f32 %v786_v10, %v715_v1 }
 0x115   :  { %v381_v13 = vsel %vm377_vm3, %v371_v9, %v379_v12  ;;  %v374_v14 = vadd.f32 %v373_v7, %v333_v0 }
 0x116   :  { %v386_v15 = vrot.slane %v381_v13, 7  ;;  %v395_v18 = vrot.slane %v381_v13, 1 }
 0x117   :  { %vm378_vm4 = vcmp.gt.f32.partialorder %v374_v14, 0.0  ;;  %v380_v16 = vmul.f32 0.01, %v374_v14 }
 0x118   :  { %391 = vst [vmem:[#allocation2] sm:$0xfe] %v386_v15 }
 0x119   :  { %v382_v17 = vsel %vm378_vm4, %v374_v14, %v380_v16 }
 0x11a   :  { %v387_v19 = vrot.slane %v382_v17, 7  ;;  %v396_v20 = vrot.slane %v382_v17, 1  ;;  %v410_v21 = vpack.c.bf16 %v382_v17, %v381_v13 }
 0x11c   :  { %v388_v22 = vsel %vm68_vm1, %v386_v15, %v387_v19  ;;  %v397_v25 = vsel %vm78_vm2, %v395_v18, %v396_v20  ;;  %401 = vst [vmem:[#allocation2 + $0x28] sm:$0x7f] %v396_v20  ;;  %643 = vmatprep.mubr.bf16.mxu0 %v410_v21 }
 0x11f   :  { %v403_v26 = vld [vmem:[#allocation2] sm:$0xff] }
 0x120   :  { %v409_v27 = vpack.c.bf16 %v388_v22, %v403_v26 }
 0x122   :  { %644 = vmatmul.mubr.bf16.vlgmr.msra.gmra.mxu0 %v409_v27 }
 0x123   :  { %v408_v28 = vld [vmem:[#allocation2 + $0x28] sm:$0xff] }
 0x124   :  { %v411_v29 = vpack.c.bf16 %v408_v28, %v397_v25 }
 0x126   :  { %864 = vmatmul.mubr.bf16.vlgmr.msra.gmra.mxu1 %v411_v29 }
 0x1e2   :  { %v812_v30 = vpop.f32.mrf.mxu0 }
 0x1e4   :  { %v813_v32 = vpop.f32.mrf.mxu0 }
 0x1e5   :  { %v814_v33 = vadd.f32 %v813_v32, %v812_v30 }
 0x1e6   :  { %v686_v34 = vpop.f32.mrf.mxu1  ;;  %v815_v35 = vpop.f32.mrf.mxu0 }
 0x1e7   :  { %v646_v36 = vadd.f32 %v814_v33, %v740_v31 }
 0x1e8   :  { %v865_v37 = vpop.f32.mrf.mxu1  ;;  %v816_v38 = vpop.f32.mrf.mxu0 }
 0x1e9   :  { %v687_v39 = vadd.f32 %v686_v34, %v646_v36  ;;  %v817_v40 = vadd.f32 %v816_v38, %v815_v35 }
 0x1ea   :  { %v689_v41 = vpop.f32.mrf.mxu1 }
 0x1eb   :  { %v649_v42 = vadd.f32 %v817_v40, %v740_v31  ;;  %v693_v43 = vadd.f32 %v687_v39, %v1073_v23 }
 0x1ec   :  { %v866_v44 = vpop.f32.mrf.mxu1 }
 0x1ed   :  { %v690_v45 = vadd.f32 %v689_v41, %v649_v42  ;;  %695 = vst [vmem:[#allocation9] sm:$0xff] %v693_v43 }
 0x1ef   :  { %v694_v46 = vadd.f32 %v690_v45, %v1075_v24 }
 0x1f1   :  { %696 = vst [vmem:[#allocation9 + $0x8] sm:$0xff] %v694_v46 }
 0x1f2   :  { %996 = shalt.err (!%p993_p5)
}
 0x1f3   :  { %708 = dma.vmem_to_hbm [thread:$0]  %s703_s13, 256, %s1120_s5, [#allocation5], %s1015_s28, %s1015_s28, %s1016_s29  }
 0x1f4   :  { %1009 = dma.done.wait [#allocation5], 256  }
 0x1f5   :  { %1010 = vsyncadd [#allocation5], 4294967040 }
 0x1f6   :  { %712 = vsyncpa [#allocation4], 1 }
 0x1f7   :  { %713 = vsyncpa [#allocation7], 1 }
 0x1f8   :  { %714 = vsyncpa [#allocation5], 1 }

</bundles_post_ra>
